<compile_context>
chip_gen: v6e
topology: v6e:2x2x1
jax: 0.10.0
libtpu: 0.0.40
codegen_flags: <defaults>
</compile_context>

<pallas_src>
import jax
import jax.numpy as jnp
from jax.experimental import pallas as pl
from jax.experimental.pallas import tpu as pltpu

_LANES = 128
_PALLAS_MIN_F = 128          # below one lane tile, fused XLA beats a custom call
_MAX_F_BLOCK = 2048          # lane block (>=512 target, v7x-safe VMEM footprint)
_MAX_B_BLOCK = 8


def _tanh2_copy_kernel(x_ref, o_ref):
    # One grid step = one of the 4 concat copies of one (bb, fb) tile.
    # Compute in f32 (v5e has no bf16 VPU/EUP); store one lane-dense vst.
    t = jnp.tanh(jnp.tanh(x_ref[...].astype(jnp.float32)))
    o_ref[...] = t.astype(o_ref.dtype)


def _pallas_forward(x):
    b, c, w = x.shape
    f = c * w
    x_flat = x.reshape(b, f)

    # Lane-align the feature axis so all stores are unmasked.
    f_blk = min(_MAX_F_BLOCK, pl.cdiv(f, _LANES) * _LANES)
    f_pad = pl.cdiv(f, f_blk) * f_blk
    if f_pad != f:
        x_flat = jnp.pad(x_flat, ((0, 0), (0, f_pad - f)))

    b_blk = _MAX_B_BLOCK if (b % _MAX_B_BLOCK == 0) else b
    nb = b // b_blk
    nf = f_pad // f_blk

    out_flat = pl.pallas_call(
        _tanh2_copy_kernel,
        out_shape=jax.ShapeDtypeStruct((b, 4 * f_pad), x.dtype),
        grid_spec=pltpu.PrefetchScalarGridSpec(
            num_scalar_prefetch=0,
            grid=(nb, nf, 4),
            in_specs=[
                # Ignores k -> the same input block stays resident across the
                # 4 copy-steps (Pallas skips the re-DMA when the block index
                # is unchanged), keeping read traffic at 1x.
                pl.BlockSpec((b_blk, f_blk), lambda ib, jf, k: (ib, jf)),
            ],
            out_specs=pl.BlockSpec(
                (b_blk, f_blk), lambda ib, jf, k: (ib, k * nf + jf)),
        ),
        compiler_params=pltpu.CompilerParams(
            dimension_semantics=("parallel", "parallel", "arbitrary")),
    )(x_flat)

    # (B, 4*Fpad) -> 4 stacked copies -> drop pad -> (B, 4*C, W). Row-major
    # reshape of the 4 stacked copies is exactly concatenation along dim 1.
    return out_flat.reshape(b, 4, f_pad)[:, :, :f].reshape(b, 4 * c, w)


def _xla_forward(x):
    # Tiny-shape fast path: fused elementwise + broadcast, no custom call.
    return jnp.tile(jnp.tanh(jnp.tanh(x)), (1, 4, 1))


def model_forward(x):
    b, c, w = x.shape
    if c * w >= _PALLAS_MIN_F:
        return _pallas_forward(x)
    return _xla_forward(x)


def _reference(x):
    # Literal translation of the PyTorch forward.
    y = jnp.tanh(jnp.concatenate([x, x], axis=1))
    return jnp.tanh(jnp.concatenate([y, y], axis=1))


if __name__ == "__main__":
    key = jax.random.PRNGKey(0)
    k_small, k_large = jax.random.split(key)

    # Spec-sized input (1, 2, 2): dispatched to the fused-XLA fast path.
    x_small = jax.random.normal(k_small, (1, 2, 2), dtype=jnp.float32)
    out_small = jax.block_until_ready(model_forward(x_small))
    assert out_small.shape == (1, 8, 2), out_small.shape
    assert jnp.allclose(out_small, _reference(x_small), atol=1e-6)

    # Larger input exercising the Pallas kernel path (F = C*W = 2048 lanes).
    x_large = jax.random.normal(k_large, (2, 4, 512), dtype=jnp.float32)
    out_large = jax.block_until_ready(model_forward(x_large))
    assert out_large.shape == (2, 16, 512), out_large.shape
    assert jnp.allclose(out_large, _reference(x_large), atol=1e-6)

    print("KERNEL_OK")
</pallas_src>

<mosaic_0001>
module attributes {stable_mosaic.version = 11 : i64} {
  func.func @_tanh2_copy_kernel(%arg0: i32, %arg1: i32, %arg2: i32, %arg3: memref<2x2048xf32, #tpu.memory_space<vmem>>, %arg4: memref<2x2048xf32, #tpu.memory_space<vmem>>) attributes {dimension_semantics = [#tpu.dimension_semantics<parallel>, #tpu.dimension_semantics<parallel>, #tpu.dimension_semantics<arbitrary>], iteration_bounds = array<i64: 1, 1, 4>, scalar_prefetch = 0 : i64, scratch_operands = 0 : i64, tpu.core_type = #tpu.core_type<tc>, window_params = [{transform_indices = @transform_0, window_bounds = array<i64: 2, 2048>}, {transform_indices = @transform_1, window_bounds = array<i64: 2, 2048>}]} {
    %c0 = arith.constant 0 : index
    %c0_0 = arith.constant 0 : index
    %0 = vector.load %arg3[%c0, %c0_0] : memref<2x2048xf32, #tpu.memory_space<vmem>>, vector<2x2048xf32>
    %1 = math.tanh %0 : vector<2x2048xf32>
    %2 = math.tanh %1 : vector<2x2048xf32>
    %c0_1 = arith.constant 0 : index
    %c0_2 = arith.constant 0 : index
    %3 = vector.load %arg4[%c0_1, %c0_2] : memref<2x2048xf32, #tpu.memory_space<vmem>>, vector<2x2048xf32>
    tpu.vector_store %arg4[%c0_1, %c0_2], %2 {strides = array<i32>} : memref<2x2048xf32, #tpu.memory_space<vmem>>, vector<2x2048xf32>,
    return
  }
  func.func @transform_0(%arg0: i32, %arg1: i32, %arg2: i32) -> (i32, i32) {
    %c0_i32 = arith.constant 0 : i32
    return %arg0, %arg1 : i32, i32
  }
  func.func @transform_1(%arg0: i32, %arg1: i32, %arg2: i32) -> (i32, i32) {
    %c1_i32 = arith.constant 1 : i32
    %0 = arith.muli %arg2, %c1_i32 : i32
    %1 = arith.addi %0, %arg1 : i32
    %c0_i32 = arith.constant 0 : i32
    return %arg0, %1 : i32, i32
  }
}

</mosaic_0001>

<bundles_post_ra>
// kernel: tpu_custom_call.1
= control target key start
LH: loop header
LB: loop body
LE: loop exit
PB: predicated region body
PF: predicated region fallthrough
CT: control target
= control target key end

     0   :  { %6 = vsyncpa [#allocation3], 0  ;;  %s601_s0 = inlined_call_operand.hbm [shape: f32[2,2048], index: 0, kind: input, shape index: {}]   ;;  %s602_s1 = inlined_call_operand.hbm [shape: f32[2,8192], index: 1, kind: output, shape index: {}]  }
   0x1   :  { %7 = vsyncpa [#allocation4], 0 }
   0x2   :  { %9 = vsyncpa [#allocation4 + $0x1], 0  ;;  %s474_s6 = smov 0   ;;  %s476_s7 = smov 0  }
   0x3   :  { %s478_s8 = smov 0   ;;  %s480_s9 = smov 0  }
   0x4   :  { %s482_s10 = smov 0   ;;  %s484_s11 = smov 0  }
   0x5 LB: > { %s259_s12 = sadd.s32 4294967295, %s460_s11   ;;  %s260_s13 = sadd.s32 4294967294, %s460_s11   ;;  %s460_s11 = sphi %s484_s11, %s15_s11   ;;  %s456_s10 = sphi %s482_s10, %s611_s10   ;;  %s452_s9 = sphi %s480_s9, %s610_s9   ;;  %s448_s8 = sphi %s478_s8, %s609_s8   ;;  %s444_s7 = sphi %s476_s7, %s608_s7   ;;  %s440_s6 = sphi %s474_s6, %s607_s6  }
   0x6   : > { %s27_s14 = sadd.s32 1, %s456_s10  ;;  %s73_s15 = sadd.s32 1, %s448_s8 }
   0x7   : > { %p28_p0 = scmp.ge.s32.totalorder %s27_s14, 4  ;;  %p83_p1 = scmp.ne.s32.totalorder %s448_s8, %s444_s7 }
   0x8   : > { %p84_p2 = scmp.eq.s32.totalorder %s259_s12, 3  ;;  %p89_p3 = scmp.ne.s32.totalorder %s444_s7, %s440_s6 }
   0x9   : > { %s613_s14 = smov (%p28_p0, %s27_s14), 0  ;;  %p90_p5 = scmp.eq.s32.totalorder %s260_s13, 3 }
   0xa   : > { %p514_p4 = por %p84_p2, %p83_p1  ;;  %s69_s17 = ssub.s32 %s456_s10, %s613_s14 }
   0xb   : > { %p261_p6 = scmp.ge.s32.totalorder %s460_s11, 1  ;;  %p71_p7 = scmp.eq.s32.totalorder %s69_s17, 0 }
   0xc   : > { %p521_p8 = por %p90_p5, %p89_p3  ;;  %p97_p9 = scmp.lt.s32.totalorder %s460_s11, 5 }
   0xd   : > { %s527_s19 = scalar_select %p71_p7, %s448_s8, %s73_s15  }
   0xe   : > { %p529_p10 = pnand %p261_p6, %p97_p9  ;;  %p533_p11 = scmp.eq.s32.totalorder %s259_s12, 0 }
   0xf   : > { %s462_s22 = smov [#allocation2]  }
  0x10   : > { %p278_p12 = pneg %p529_p10  ;;  %s115_s23 = sshll.u32 %s462_s22, 4  ;;  %s116_s23 = int_to_ptr.vmem [resolvable:$true] %s115_s23 }
  0x11   : > { %s365_s24 = scalar_lea.vmem %s116_s23, 512  ;;  %p373_p5 = scmp.lt.s32.totalorder %s116_s23, %s116_s23 }
  0x12   : > { %p279_p13 = pnand %p533_p11, %p278_p12  ;;  %p366_p1 = scmp.ne.s32.totalorder %s116_s23, %s365_s24 }
  0x13   : > { %p374_p6 = scmp.lt.s32.totalorder %s365_s24, %s365_s24 }
  0x14   : > { %p356_p0 = pneg %p279_p13 }
  0x15   : > { %p375_p7 = por %p374_p6, %p373_p5 }
  0x16   : > { %p368_p2 = pnand %p366_p1, %p356_p0 }
  0x18   : > { %p369_p3 = pneg %p368_p2 }
  0x1a   : > { %p376_p9 = pnand %p375_p7, %p369_p3 }
  0x1c   : > { %379 = shalt.err (!%p376_p9)
}
  0x1d   : > { %281 = dma.hbm_to_vmem [thread:$0]  (!%p279_p13), %s601_s0, 512, %s116_s23, [#allocation3]  }
  0x1e   : > { %128 = sbr.rel (%p529_p10) target bundleno = 81 (0x51), region = 24 }
  0x23   : > { %431 = dma.done.wait (%p533_p11), [#allocation3], 512  }
  0x24   : > { %433 = vsyncadd (%p533_p11), [#allocation3], 4294966784  ;;  %v146_v0 = vld [vmem:[#allocation2] sm:$0xff]  ;;  %v147_v1 = vld [vmem:[#allocation2 + $0x8] sm:$0xff]  ;;  %s140_s27 = sand.u32 1, %s444_s7   ;;  %s271_s2 = sshll.u32 %s452_s9, 9 }
  0x25   : > { %v148_v2 = vld [vmem:[#allocation2 + $0x10] sm:$0xff]  ;;  %338 = vtanh.f32 %v146_v0  ;;  %v149_v3 = vld [vmem:[#allocation2 + $0x18] sm:$0xff]  ;;  %s265_s28 = sshll.u32 %s140_s27, 5  ;;  %s557_s5 = scalar_lea.hbm %s602_s1, %s271_s2 }
  0x26   : > { %340 = vtanh.f32 %v147_v1  ;;  %s142_s29 = scalar_lea.vmem [#allocation5], %s265_s28  ;;  %s163_s12 = scalar_lea.sflag [#allocation4], %s140_s27 }
  0x27   : > { %342 = vtanh.f32 %v148_v2  ;;  %s180_s30 = sshll.u32 %s142_s29, 4  ;;  %s463_s13 = smov [#allocation5]   ;;  %s552_s30 = int_to_ptr.vmem [resolvable:$true] %s180_s30 }
  0x28   : > { %344 = vtanh.f32 %v149_v3  ;;  %s380_s9 = scalar_lea.vmem %s552_s30, 512  ;;  %s384_s15 = sshll.u32 %s463_s13, 4  ;;  %s385_s15 = int_to_ptr.vmem [resolvable:$false] %s384_s15 }
  0x29   : > { %p381_p10 = scmp.ne.s32.totalorder %s552_s30, %s380_s9  ;;  %s386_s17 = scalar_lea.vmem %s385_s15, 1024 }
  0x2a   : > { %p387_p13 = scmp.lt.s32.totalorder %s552_s30, %s385_s15  ;;  %p388_p0 = scmp.lt.s32.totalorder %s386_s17, %s380_s9 }
  0x2b   : > { %p382_p11 = pnand %p381_p10, %p514_p4 }
  0x2c   : > { %p389_p1 = por %p388_p0, %p387_p13 }
  0x2d   : > { %p383_p12 = pneg %p382_p11 }
  0x2f   : > { %p390_p2 = pnand %p389_p1, %p383_p12 }
  0x32   : > { %v339_v4 = vpop.eup %338 }
  0x33   : > { %v341_v5 = vpop.eup %340  ;;  %346 = vtanh.f32 %v339_v4 }
  0x34   : > { %v343_v6 = vpop.eup %342  ;;  %348 = vtanh.f32 %v341_v5 }
  0x35   : > { %v345_v7 = vpop.eup %344  ;;  %350 = vtanh.f32 %v343_v6 }
  0x36   : > { %352 = vtanh.f32 %v345_v7 }
  0x40   : > { %v347_v8 = vpop.eup %346 }
  0x41   : > { %v349_v9 = vpop.eup %348  ;;  %158 = vst [vmem:[%s142_s29] sm:$0xff] %v347_v8 }
  0x42   : > { %v351_v10 = vpop.eup %350  ;;  %159 = vst [vmem:[%s142_s29 + $0x8] sm:$0xff] %v349_v9 }
  0x43   : > { %v353_v11 = vpop.eup %352  ;;  %160 = vst [vmem:[%s142_s29 + $0x10] sm:$0xff] %v351_v10 }
  0x44   : > { %161 = vst [vmem:[%s142_s29 + $0x18] sm:$0xff] %v353_v11 }
  0x45   : > { %393 = shalt.err (!%p390_p2)
}
  0x46   : > { %s394_s20 = scalar_lea.hbm %s557_s5, 512  ;;  %s398_s23 = scalar_lea.hbm %s602_s1, 2048 }
  0x47   : > { %p395_p3 = scmp.ne.s32.totalorder %s557_s5, %s394_s20  ;;  %p399_p7 = scmp.lt.s32.totalorder %s557_s5, %s602_s1 }
  0x48   : > { %p400_p9 = scmp.lt.s32.totalorder %s398_s23, %s394_s20 }
  0x49   : > { %p396_p5 = pnand %p395_p3, %p514_p4 }
  0x4a   : > { %p401_p10 = por %p400_p9, %p399_p7 }
  0x4b   : > { %p397_p6 = pneg %p396_p5 }
  0x4d   : > { %p402_p11 = pnand %p401_p10, %p397_p6 }
  0x4f   : > { %405 = shalt.err (!%p402_p11)
}
  0x50   : > { %276 = dma.vmem_to_hbm [thread:$0]  (%p514_p4), %s552_s30, 512, %s557_s5, %s163_s12  }
  0x51 PF: > { %p288_p12 = scmp.ge.s32.totalorder %s460_s11, 2  ;;  %s192_s26 = sand.u32 1, %s440_s6  }
  0x52   : > { %s193_s27 = scalar_lea.sflag [#allocation4], %s192_s26 }
  0x53   : > { %p283_p13 = pnand %p288_p12, %p521_p8 }
  0x55   : > { %p284_p0 = pneg %p283_p13 }
  0x57   : > { %435 = dma.done.wait (%p284_p0), %s193_s27, 512  }
  0x58   : > { %437 = vsyncadd (%p284_p0), %s193_s27, 4294966784  ;;  %s15_s11 = sadd.s32 1, %s460_s11   ;;  %s607_s6 = smov %s444_s7 }
  0x59   : > { %p12_p1 = scmp.ge.s32.totalorder %s15_s11, 6   ;;  %s608_s7 = smov %s448_s8 }
  0x5a   : > { %s609_s8 = smov %s527_s19  ;;  %s610_s9 = smov %s456_s10 }
  0x5b   : > { %s611_s10 = smov %s613_s14  ;;  %14 = sbr.rel (!%p12_p1) target bundleno = 5 (0x5), region = 62 }
  0x60   :  { %198 = vsyncpa [#allocation3], 1 }
  0x61   :  { %200 = vsyncpa [#allocation3 + $0x1], 1 }
  0x62   :  { %201 = vsyncpa [#allocation4], 1 }
  0x63   :  { %203 = vsyncpa [#allocation4 + $0x1], 1 }

</bundles_post_ra>
